<compile_context>
chip_gen: v7x
topology: tpu7x:2x2x1
jax: 0.10.0
libtpu: 0.0.40
codegen_flags: <defaults>
</compile_context>

<pallas_src>
import functools

import jax
import jax.numpy as jnp
from jax.experimental import pallas as pl
from jax.experimental.pallas import tpu as pltpu

ALPHA = 1.0
GAMMA = 2.0  # statically 2 -> (1 - pt)**2 is computed as w*w, never a float pow


def _focal_loss_kernel(logits_ref, targets_ref, out_ref, *, n_total, tile_n):
    """One grid step: writes this tile's focal-loss partial sum to out_ref (1,1,1)."""
    x = logits_ref[...].astype(jnp.float32)            # (TN, C), single upcast/tile
    tn, c = x.shape

    t = targets_ref[...]
    if t.ndim == 3:
        # Lane-dense (1, 1, TN) int32 block: contiguous DMA, small VMEM block.
        # Relayout lanes -> sublanes once here (XLU / through-memory work that
        # hides under the logits DMA).
        tgt = jnp.reshape(t, (tn, 1))
    else:
        tgt = t                                          # (TN, 1) fallback layout

    # Row-wise numerically stable softmax pieces.
    m = jnp.max(x, axis=-1, keepdims=True)               # (TN, 1)
    e = jnp.exp(x - m)                                   # (TN, C)
    s = jnp.sum(e, axis=-1, keepdims=True)               # (TN, 1)

    # Target-class gather via a one-hot mask (VPU/XLU work hidden under DMA).
    col = jax.lax.broadcasted_iota(jnp.int32, (tn, c), 1)
    onehot = col == tgt                                   # (TN, C)
    x_t = jnp.sum(jnp.where(onehot, x, 0.0), axis=-1, keepdims=True)  # logit_t
    e_t = jnp.sum(jnp.where(onehot, e, 0.0), axis=-1, keepdims=True)  # exp(logit_t - m)

    ce = (m - x_t) + jnp.log(s)                          # = logsumexp - logit_t
    pt = e_t * pl.reciprocal(s, approx=True)             # = exp(-ce), no 2nd EUP exp
    w = 1.0 - pt
    focal = (ALPHA * ce) * (w * w)                        # gamma == 2: square, no pow

    # Full-tile partial sum; grid steps are independent -> "parallel" axis.
    out_ref[...] = jnp.broadcast_to(jnp.sum(focal), (1, 1, 1))

    # Ragged tail: only the last tile pays for the row mask, and only when the
    # batch is actually ragged.  Padded rows may hold garbage logits, but
    # jnp.where selects an exact 0.0 for them even if `focal` is NaN/Inf there.
    rem = n_total % tile_n
    if rem:
        @pl.when(pl.program_id(0) == pl.num_programs(0) - 1)
        def _mask_ragged_tail():
            row = jax.lax.broadcasted_iota(jnp.int32, (tn, 1), 0)
            masked = jnp.where(row < rem, focal, 0.0)
            out_ref[...] = jnp.broadcast_to(jnp.sum(masked), (1, 1, 1))


def _focal_loss_call(logits, targets, tile_n, *, lane_dense_targets):
    n, c = logits.shape
    itemsize = jnp.dtype(logits.dtype).itemsize
    num_tiles = pl.cdiv(n, tile_n)

    if lane_dense_targets:
        pad = num_tiles * tile_n - n
        tgt_arr = jnp.pad(targets.astype(jnp.int32), (0, pad))
        tgt_arr = tgt_arr.reshape(num_tiles, 1, tile_n)
        tgt_spec = pl.BlockSpec((1, 1, tile_n), lambda i: (i, 0, 0))
    else:
        tgt_arr = targets.astype(jnp.int32).reshape(n, 1)
        tgt_spec = pl.BlockSpec((tile_n, 1), lambda i: (i, 0))

    kernel = functools.partial(_focal_loss_kernel, n_total=n, tile_n=tile_n)

    partials = pl.pallas_call(
        kernel,
        out_shape=jax.ShapeDtypeStruct((num_tiles, 1, 1), jnp.float32),
        grid_spec=pltpu.PrefetchScalarGridSpec(
            num_scalar_prefetch=0,
            grid=(num_tiles,),
            in_specs=[
                pl.BlockSpec((tile_n, c), lambda i: (i, 0)),
                tgt_spec,
            ],
            out_specs=pl.BlockSpec((1, 1, 1), lambda i: (i, 0, 0)),
        ),
        compiler_params=pltpu.CompilerParams(
            # independent per-tile partial sums -> shard across TCs on v7x
            dimension_semantics=("parallel",),
        ),
        cost_estimate=pl.CostEstimate(
            flops=8 * n * c,
            transcendentals=n * c + 2 * n,
            bytes_accessed=n * c * itemsize + n * 4 + num_tiles * 4,
        ),
    )(logits, tgt_arr)

    # reduction='mean' over the true N; tiny finalize outside the kernel.
    return jnp.sum(partials) / jnp.float32(n)


def _auto_tile_n(n, c, itemsize):
    # Byte-based tile sizing: ~2 MiB of logits per tile (near the 85% HBM
    # roofline knee) regardless of C; 2 inputs x 2 pipeline buffers stays well
    # under default scoped VMEM on v5e/v6e/v7x.  Row cap raised 1024 -> 32768;
    # it only binds for very small C, bounding the padded (TN,1) per-row chain.
    budget = 2 * 1024 * 1024
    rows = budget // max(1, c * itemsize)
    return max(8, min(rows, 32768))


def focal_loss(logits, targets, *, tile_n=None):
    """logits: (N, C) float (f32/bf16), targets: (N,) int -> scalar f32 mean focal loss."""
    n, c = logits.shape
    itemsize = jnp.dtype(logits.dtype).itemsize
    if tile_n is None:
        tile_n = _auto_tile_n(n, c, itemsize)
    tile_n = max(8, (int(tile_n) // 8) * 8)      # f32 sublane multiple
    tile_n = min(tile_n, pl.cdiv(n, 8) * 8)      # never tile past the padded N

    try:
        return _focal_loss_call(logits, targets, tile_n, lane_dense_targets=True)
    except Exception:
        # Conservative fallback (same kernel math): lane-sparse (TN, 1) targets
        # -- the previous, known-good block layout -- with a tighter row cap so
        # its padded targets buffers stay small.  Covers Mosaic builds without
        # the lane->sublane relayout and scoped-VMEM-limit failures.
        return _focal_loss_call(
            logits, targets, min(tile_n, 2048), lane_dense_targets=False)


def focal_loss_ref(logits, targets):
    # Pure-JAX reference mirroring the PyTorch module (f32 math).
    logits = logits.astype(jnp.float32)
    logp = jax.nn.log_softmax(logits, axis=-1)
    ce = -jnp.take_along_axis(logp, targets[:, None].astype(jnp.int32), axis=-1)[:, 0]
    pt = jnp.exp(-ce)
    return jnp.mean(ALPHA * (1.0 - pt) ** GAMMA * ce)


if __name__ == "__main__":
    key = jax.random.PRNGKey(0)
    k1, k2 = jax.random.split(key)

    # small shapes: batch=64, classes=32; row tile 16 -> 4 pipelined grid steps
    N, C = 64, 32
    logits = jax.random.normal(k1, (N, C), dtype=jnp.float32)
    targets = jax.random.randint(k2, (N,), 0, C, dtype=jnp.int32)

    out = jax.block_until_ready(focal_loss(logits, targets, tile_n=16))
    ref = focal_loss_ref(logits, targets)
    assert jnp.allclose(out, ref, rtol=2e-3, atol=1e-6), (out, ref)

    # ragged batch (N not a multiple of the row tile) exercises the masked tail
    out2 = jax.block_until_ready(focal_loss(logits[:50], targets[:50], tile_n=16))
    ref2 = focal_loss_ref(logits[:50], targets[:50])
    assert jnp.allclose(out2, ref2, rtol=2e-3, atol=1e-6), (out2, ref2)

    # bf16 logits stay bf16 in HBM; auto (byte-based) tile size, single tile here
    logits_bf16 = logits.astype(jnp.bfloat16)
    out3 = jax.block_until_ready(focal_loss(logits_bf16, targets))
    ref3 = focal_loss_ref(logits_bf16, targets)
    assert jnp.allclose(out3, ref3, rtol=2e-3, atol=1e-5), (out3, ref3)

    print("KERNEL_OK")
</pallas_src>

<mosaic_0001>
module attributes {stable_mosaic.version = 11 : i64} {
  func.func @_focal_loss_kernel(%arg0: i32, %arg1: memref<16x32xf32, #tpu.memory_space<vmem>>, %arg2: memref<1x1x16xi32, #tpu.memory_space<vmem>>, %arg3: memref<1x1x1xf32, #tpu.memory_space<vmem>>) attributes {dimension_semantics = [#tpu.dimension_semantics<parallel>], iteration_bounds = array<i64: 4>, scalar_prefetch = 0 : i64, scratch_operands = 0 : i64, tpu.core_type = #tpu.core_type<tc>, window_params = [{transform_indices = @transform_0, window_bounds = array<i64: 16, 32>}, {transform_indices = @transform_1, window_bounds = array<i64: 1, 1, 16>}, {transform_indices = @transform_2, window_bounds = array<i64: 1, 1, 1>}]} {
    %c0 = arith.constant 0 : index
    %c0_0 = arith.constant 0 : index
    %0 = vector.load %arg1[%c0, %c0_0] : memref<16x32xf32, #tpu.memory_space<vmem>>, vector<16x32xf32>
    %c0_1 = arith.constant 0 : index
    %c0_2 = arith.constant 0 : index
    %c0_3 = arith.constant 0 : index
    %1 = vector.load %arg2[%c0_1, %c0_2, %c0_3] : memref<1x1x16xi32, #tpu.memory_space<vmem>>, vector<1x1x16xi32>
    %2 = vector.shape_cast %1 : vector<1x1x16xi32> to vector<16x1xi32>
    %cst = arith.constant dense<0xFF800000> : vector<16xf32>
    %3 = vector.multi_reduction <maximumf>, %0, %cst [1] : vector<16x32xf32> to vector<16xf32>
    %4 = vector.shape_cast %3 : vector<16xf32> to vector<16x1xf32>
    %5 = vector.broadcast %4 : vector<16x1xf32> to vector<16x32xf32>
    %6 = arith.subf %0, %5 : vector<16x32xf32>
    %7 = math.exp %6 : vector<16x32xf32>
    %cst_4 = arith.constant dense<0.000000e+00> : vector<16xf32>
    %8 = vector.multi_reduction <add>, %7, %cst_4 [1] : vector<16x32xf32> to vector<16xf32>
    %9 = vector.shape_cast %8 : vector<16xf32> to vector<16x1xf32>
    %10 = tpu.iota {dimensions = array<i32: 1>} : vector<16x32xi32>
    %11 = vector.broadcast %2 : vector<16x1xi32> to vector<16x32xi32>
    %12 = arith.cmpi eq, %10, %11 : vector<16x32xi32>
    %cst_5 = arith.constant 0.000000e+00 : f32
    %13 = vector.broadcast %cst_5 : f32 to vector<16x32xf32>
    %14 = arith.select %12, %0, %13 : vector<16x32xi1>, vector<16x32xf32>
    %cst_6 = arith.constant dense<0.000000e+00> : vector<16xf32>
    %15 = vector.multi_reduction <add>, %14, %cst_6 [1] : vector<16x32xf32> to vector<16xf32>
    %16 = vector.shape_cast %15 : vector<16xf32> to vector<16x1xf32>
    %cst_7 = arith.constant 0.000000e+00 : f32
    %17 = vector.broadcast %cst_7 : f32 to vector<16x32xf32>
    %18 = arith.select %12, %7, %17 : vector<16x32xi1>, vector<16x32xf32>
    %cst_8 = arith.constant dense<0.000000e+00> : vector<16xf32>
    %19 = vector.multi_reduction <add>, %18, %cst_8 [1] : vector<16x32xf32> to vector<16xf32>
    %20 = vector.shape_cast %19 : vector<16xf32> to vector<16x1xf32>
    %21 = arith.subf %4, %16 : vector<16x1xf32>
    %22 = math.log %9 : vector<16x1xf32>
    %23 = arith.addf %21, %22 : vector<16x1xf32>
    %24 = tpu.reciprocal %9 {approx = true} : vector<16x1xf32> -> vector<16x1xf32>
    %25 = arith.mulf %20, %24 : vector<16x1xf32>
    %cst_9 = arith.constant 1.000000e+00 : f32
    %26 = vector.broadcast %cst_9 : f32 to vector<16x1xf32>
    %27 = arith.subf %26, %25 : vector<16x1xf32>
    %cst_10 = arith.constant 1.000000e+00 : f32
    %28 = vector.broadcast %cst_10 : f32 to vector<16x1xf32>
    %29 = arith.mulf %28, %23 : vector<16x1xf32>
    %30 = arith.mulf %27, %27 : vector<16x1xf32>
    %31 = arith.mulf %29, %30 : vector<16x1xf32>
    %32 = vector.shape_cast %31 : vector<16x1xf32> to vector<1x16x1xf32>
    %cst_11 = arith.constant dense<0.000000e+00> : vector<1xf32>
    %33 = vector.multi_reduction <add>, %32, %cst_11 [1, 2] : vector<1x16x1xf32> to vector<1xf32>
    %34 = vector.shape_cast %33 : vector<1xf32> to vector<1x1x1xf32>
    %35 = vector.extract %34[0, 0, 0] : f32 from vector<1x1x1xf32>
    %36 = vector.broadcast %35 : f32 to vector<1x1x1xf32>
    %c0_12 = arith.constant 0 : index
    %c0_13 = arith.constant 0 : index
    %c0_14 = arith.constant 0 : index
    %37 = vector.load %arg3[%c0_12, %c0_13, %c0_14] : memref<1x1x1xf32, #tpu.memory_space<vmem>>, vector<1x1x1xf32>
    tpu.vector_store %arg3[%c0_12, %c0_13, %c0_14], %36 {strides = array<i32>} : memref<1x1x1xf32, #tpu.memory_space<vmem>>, vector<1x1x1xf32>,
    return
  }
  func.func @transform_0(%arg0: i32) -> (i32, i32) {
    %c0_i32 = arith.constant 0 : i32
    %c0_i32_0 = arith.constant 0 : i32
    return %arg0, %c0_i32 : i32, i32
  }
  func.func @transform_1(%arg0: i32) -> (i32, i32, i32) {
    %c0_i32 = arith.constant 0 : i32
    %c0_i32_0 = arith.constant 0 : i32
    %c0_i32_1 = arith.constant 0 : i32
    return %arg0, %c0_i32, %c0_i32_0 : i32, i32, i32
  }
  func.func @transform_2(%arg0: i32) -> (i32, i32, i32) {
    %c0_i32 = arith.constant 0 : i32
    %c0_i32_0 = arith.constant 0 : i32
    %c0_i32_1 = arith.constant 0 : i32
    return %arg0, %c0_i32, %c0_i32_0 : i32, i32, i32
  }
}

module attributes {stable_mosaic.version = 11 : i64} {
  func.func @_focal_loss_kernel(%arg0: i32, %arg1: memref<16x32xf32, #tpu.memory_space<vmem>>, %arg2: memref<16x1xi32, #tpu.memory_space<vmem>>, %arg3: memref<1x1x1xf32, #tpu.memory_space<vmem>>) attributes {dimension_semantics = [#tpu.dimension_semantics<parallel>], iteration_bounds = array<i64: 4>, scalar_prefetch = 0 : i64, scratch_operands = 0 : i64, tpu.core_type = #tpu.core_type<tc>, window_params = [{transform_indices = @transform_0, window_bounds = array<i64: 16, 32>}, {transform_indices = @transform_1, window_bounds = array<i64: 16, 1>}, {transform_indices = @transform_2, window_bounds = array<i64: 1, 1, 1>}]} {
    %c0 = arith.constant 0 : index
    %c0_0 = arith.constant 0 : index
    %0 = vector.load %arg1[%c0, %c0_0] : memref<16x32xf32, #tpu.memory_space<vmem>>, vector<16x32xf32>
    %c0_1 = arith.constant 0 : index
    %c0_2 = arith.constant 0 : index
    %1 = vector.load %arg2[%c0_1, %c0_2] : memref<16x1xi32, #tpu.memory_space<vmem>>, vector<16x1xi32>
    %cst = arith.constant dense<0xFF800000> : vector<16xf32>
    %2 = vector.multi_reduction <maximumf>, %0, %cst [1] : vector<16x32xf32> to vector<16xf32>
    %3 = vector.shape_cast %2 : vector<16xf32> to vector<16x1xf32>
    %4 = vector.broadcast %3 : vector<16x1xf32> to vector<16x32xf32>
    %5 = arith.subf %0, %4 : vector<16x32xf32>
    %6 = math.exp %5 : vector<16x32xf32>
    %cst_3 = arith.constant dense<0.000000e+00> : vector<16xf32>
    %7 = vector.multi_reduction <add>, %6, %cst_3 [1] : vector<16x32xf32> to vector<16xf32>
    %8 = vector.shape_cast %7 : vector<16xf32> to vector<16x1xf32>
    %9 = tpu.iota {dimensions = array<i32: 1>} : vector<16x32xi32>
    %10 = vector.broadcast %1 : vector<16x1xi32> to vector<16x32xi32>
    %11 = arith.cmpi eq, %9, %10 : vector<16x32xi32>
    %cst_4 = arith.constant 0.000000e+00 : f32
    %12 = vector.broadcast %cst_4 : f32 to vector<16x32xf32>
    %13 = arith.select %11, %0, %12 : vector<16x32xi1>, vector<16x32xf32>
    %cst_5 = arith.constant dense<0.000000e+00> : vector<16xf32>
    %14 = vector.multi_reduction <add>, %13, %cst_5 [1] : vector<16x32xf32> to vector<16xf32>
    %15 = vector.shape_cast %14 : vector<16xf32> to vector<16x1xf32>
    %cst_6 = arith.constant 0.000000e+00 : f32
    %16 = vector.broadcast %cst_6 : f32 to vector<16x32xf32>
    %17 = arith.select %11, %6, %16 : vector<16x32xi1>, vector<16x32xf32>
    %cst_7 = arith.constant dense<0.000000e+00> : vector<16xf32>
    %18 = vector.multi_reduction <add>, %17, %cst_7 [1] : vector<16x32xf32> to vector<16xf32>
    %19 = vector.shape_cast %18 : vector<16xf32> to vector<16x1xf32>
    %20 = arith.subf %3, %15 : vector<16x1xf32>
    %21 = math.log %8 : vector<16x1xf32>
    %22 = arith.addf %20, %21 : vector<16x1xf32>
    %23 = tpu.reciprocal %8 {approx = true} : vector<16x1xf32> -> vector<16x1xf32>
    %24 = arith.mulf %19, %23 : vector<16x1xf32>
    %cst_8 = arith.constant 1.000000e+00 : f32
    %25 = vector.broadcast %cst_8 : f32 to vector<16x1xf32>
    %26 = arith.subf %25, %24 : vector<16x1xf32>
    %cst_9 = arith.constant 1.000000e+00 : f32
    %27 = vector.broadcast %cst_9 : f32 to vector<16x1xf32>
    %28 = arith.mulf %27, %22 : vector<16x1xf32>
    %29 = arith.mulf %26, %26 : vector<16x1xf32>
    %30 = arith.mulf %28, %29 : vector<16x1xf32>
    %31 = vector.shape_cast %30 : vector<16x1xf32> to vector<1x16x1xf32>
    %cst_10 = arith.constant dense<0.000000e+00> : vector<1xf32>
    %32 = vector.multi_reduction <add>, %31, %cst_10 [1, 2] : vector<1x16x1xf32> to vector<1xf32>
    %33 = vector.shape_cast %32 : vector<1xf32> to vector<1x1x1xf32>
    %34 = vector.extract %33[0, 0, 0] : f32 from vector<1x1x1xf32>
    %35 = vector.broadcast %34 : f32 to vector<1x1x1xf32>
    %c0_11 = arith.constant 0 : index
    %c0_12 = arith.constant 0 : index
    %c0_13 = arith.constant 0 : index
    %36 = vector.load %arg3[%c0_11, %c0_12, %c0_13] : memref<1x1x1xf32, #tpu.memory_space<vmem>>, vector<1x1x1xf32>
    tpu.vector_store %arg3[%c0_11, %c0_12, %c0_13], %35 {strides = array<i32>} : memref<1x1x1xf32, #tpu.memory_space<vmem>>, vector<1x1x1xf32>,
    return
  }
  func.func @transform_0(%arg0: i32) -> (i32, i32) {
    %c0_i32 = arith.constant 0 : i32
    %c0_i32_0 = arith.constant 0 : i32
    return %arg0, %c0_i32 : i32, i32
  }
  func.func @transform_1(%arg0: i32) -> (i32, i32) {
    %c0_i32 = arith.constant 0 : i32
    %c0_i32_0 = arith.constant 0 : i32
    return %arg0, %c0_i32 : i32, i32
  }
  func.func @transform_2(%arg0: i32) -> (i32, i32, i32) {
    %c0_i32 = arith.constant 0 : i32
    %c0_i32_0 = arith.constant 0 : i32
    %c0_i32_1 = arith.constant 0 : i32
    return %arg0, %c0_i32, %c0_i32_0 : i32, i32, i32
  }
}

</mosaic_0001>

<bundles_post_ra>
// kernel: tpu_custom_call.1
= control target key start
LH: loop header
LB: loop body
LE: loop exit
PB: predicated region body
PF: predicated region fallthrough
CT: control target
= control target key end

     0   :  { %s354_s9 = smov 0   ;;  %s386_s0 = inlined_call_operand.vmem [shape: f32[64,32], index: 0, kind: input, shape index: {}]   ;;  %s387_s1 = inlined_call_operand.vmem [shape: s32[4,1,16], index: 1, kind: input, shape index: {}]   ;;  %s388_s2 = inlined_call_operand.vmem [shape: f32[4,1,1], index: 2, kind: output, shape index: {}]  }
   0x1 LB: > { %s299_s10 = sadd.s32 4294967295, %s337_s9   ;;  %p303_p0 = scmp.ge.s32.totalorder %s337_s9, 1  ;;  %s337_s9 = sphi %s354_s9, %s12_s9  }
   0x2   : > { %p121_p1 = scmp.lt.s32.totalorder %s337_s9, 5 }
   0x4   : > { %p122_p2 = pnand %p303_p0, %p121_p1 }
   0x5   : > { %s304_s11 = sshll.u32 (!%p122_p2), %s299_s10, 1  ;;  %p150_p3 = scmp.lt.s32.totalorder (!%p122_p2), %s299_s10, 3  ;;  %vm170_vm0 = vcmask (!%p122_p2), 261120   ;;  %v189_v10 = vlaneseq (!%p122_p2)  ;;  %vm227_vm3 = vcmask (!%p122_p2), 7168   ;;  %vm241_vm4 = vcmask (!%p122_p2), 0  }
   0x6   : > { %125 = sbr.rel (%p122_p2) target bundleno = 551 (0x227), region = 28  ;;  %p145_p4 = scmp.lt.s32.totalorder (!%p122_p2), %s304_s11, 7 }
   0x7   : > { %v190_v12 = vand.u32 (!%p122_p2), 127, %v189_v10 }
   0xd   : > { %s390_s10 = smov (!%p150_p3, %s299_s10), 3  ;;  %s392_s11 = smov (!%p145_p4, %s304_s11), 7 }
   0xe   : > { %s152_s14 = scalar_lea.vmem %s387_s1, %s390_s10  ;;  %s305_s15 = sshll.u32 %s392_s11, 3 }
   0xf   : > { %v306_v0 = vld [vmem:[%s152_s14] ss:$0 sm:$0xff]  ;;  %s148_s18 = scalar_lea.vmem %s386_s0, %s305_s15  ;;  %s155_s21 = scalar_lea.vmem %s388_s2, %s390_s10 }
  0x10   : > { %164 = vbcast.lane.b32.xlu1 %v306_v0, 256  ;;  %v156_v1 = vld [vmem:[%s148_s18] sm:$0xff]  ;;  %v157_v2 = vld [vmem:[%s148_s18 + $0x8] sm:$0xff] }
  0x11   : > { %v171_v3 = vsel %vm170_vm0, %v156_v1, -inf  ;;  %v174_v4 = vsel %vm170_vm0, %v157_v2, -inf }
  0x12   : > { %172 = vmax.xlane.f32.xlu0 %v171_v3 }
  0x14   : > { %168 = vbcast.lane.b32.xlu1 %v306_v0, 264 }
  0x16   : > { %175 = vmax.xlane.f32.xlu0 %v174_v4 }
  0x82   : > { %v165_v13 = vpop.permute.xlu1 %164 }
  0x83   : > { %vm191_vm1 = vcmp.eq.s32.totalorder %v190_v12, %v165_v13 }
  0x84   : > { %v193_v15 = vsel %vm191_vm1, %v156_v1, 0.0 }
  0x85   : > { %v195_v17 = vsel %vm170_vm0, %v193_v15, 0.0 }
  0x86   : > { %v169_v19 = vpop.permute.xlu1 %168 }
  0x87   : > { %vm192_vm2 = vcmp.eq.s32.totalorder %v190_v12, %v169_v19 }
  0x88   : > { %v194_v25 = vsel %vm192_vm2, %v157_v2, 0.0 }
  0x89   : > { %v198_v26 = vsel %vm170_vm0, %v194_v25, 0.0 }
  0x9f   : > { %v173_v5 = vpop.xlane.xlu0 %172 }
  0xa0   : > { %v177_v6 = vsub.f32 %v156_v1, %v173_v5 }
  0xa2   : > { %v179_v7 = vmul.f32 1.442695, %v177_v6 }
  0xa3   : > { %v176_v8 = vpop.xlane.xlu0 %175 }
  0xa4   : > { %319 = vpow2.f32 %v179_v7  ;;  %v178_v9 = vsub.f32 %v157_v2, %v176_v8 }
  0xa6   : > { %v181_v11 = vmul.f32 1.442695, %v178_v9 }
  0xa8   : > { %321 = vpow2.f32 %v181_v11 }
  0xae   : > { %v320_v14 = vpop.eup %319 }
  0xaf   : > { %v183_v16 = vsel %vm170_vm0, %v320_v14, 0.0  ;;  %v201_v21 = vsel %vm191_vm1, %v320_v14, 0.0 }
  0xb0   : > { %184 = vadd.xlane.f32.xlu0 %v183_v16  ;;  %v203_v22 = vsel %vm170_vm0, %v201_v21, 0.0 }
  0xb2   : > { %v322_v18 = vpop.eup %321 }
  0xb3   : > { %v186_v20 = vsel %vm170_vm0, %v322_v18, 0.0  ;;  %v202_v23 = vsel %vm192_vm2, %v322_v18, 0.0 }
  0xb4   : > { %196 = vadd.xlane.f32.xlu0 %v195_v17  ;;  %187 = vadd.xlane.f32.xlu1 %v186_v20  ;;  %v206_v24 = vsel %vm170_vm0, %v202_v23, 0.0 }
  0xb8   : > { %204 = vadd.xlane.f32.xlu0 %v203_v22 }
  0xbc   : > { %207 = vadd.xlane.f32.xlu0 %v206_v24 }
  0xc0   : > { %199 = vadd.xlane.f32.xlu0 %v198_v26 }
 0x13d   : > { %v185_v27 = vpop.xlane.xlu0 %184 }
 0x13e   : > { %323 = vlog2.f32 %v185_v27 }
 0x13f   : > { %325 = vrcp.f32 %v185_v27 }
 0x141   : > { %v188_v28 = vpop.xlane.xlu1 %187  ;;  %v197_v29 = vpop.xlane.xlu0 %196 }
 0x142   : > { %327 = vlog2.f32 %v188_v28  ;;  %v209_v41 = vsub.f32 %v173_v5, %v197_v29 }
 0x143   : > { %329 = vrcp.f32 %v188_v28 }
 0x145   : > { %v205_v30 = vpop.xlane.xlu0 %204 }
 0x148   : > { %v324_v31 = vpop.eup %323 }
 0x149   : > { %v326_v32 = vpop.eup %325  ;;  %v208_v33 = vpop.xlane.xlu0 %207  ;;  %v212_v36 = vmul.f32 0.6931472, %v324_v31 }
 0x14a   : > { %v219_v34 = vmul.f32 %v326_v32, %v205_v30 }
 0x14b   : > { %v215_v45 = vadd.f32 %v212_v36, %v209_v41 }
 0x14c   : > { %v328_v35 = vpop.eup %327  ;;  %v221_v37 = vsub.f32 1.0, %v219_v34 }
 0x14d   : > { %v330_v38 = vpop.eup %329  ;;  %v214_v39 = vmul.f32 0.6931472, %v328_v35  ;;  %v200_v40 = vpop.xlane.xlu0 %199 }
 0x14e   : > { %v223_v42 = vmul.f32 %v221_v37, %v221_v37  ;;  %v220_v43 = vmul.f32 %v330_v38, %v208_v33  ;;  %v210_v44 = vsub.f32 %v176_v8, %v200_v40 }
 0x150   : > { %v222_v46 = vsub.f32 1.0, %v220_v43  ;;  %v216_v47 = vadd.f32 %v214_v39, %v210_v44  ;;  %v225_v48 = vmul.f32 %v223_v42, %v215_v45 }
 0x152   : > { %v224_v49 = vmul.f32 %v222_v46, %v222_v46  ;;  %v228_v51 = vsel %vm227_vm3, %v225_v48, 0.0 }
 0x154   : > { %v226_v50 = vmul.f32 %v224_v49, %v216_v47 }
 0x156   : > { %v229_v52 = vsel %vm227_vm3, %v226_v50, 0.0 }
 0x157   : > { %v230_v53 = vadd.f32 %v229_v52, %v228_v51 }
 0x159   : > { %231 = vadd.xlane.f32.xlu0 %v230_v53 }
 0x1e6   : > { %v232_v54 = vpop.xlane.xlu0 %231 }
 0x1e7   : > { %v233_v55 = vrot.slane %v232_v54, 4 }
 0x1e9   : > { %v234_v56 = vadd.f32 %v233_v55, %v232_v54 }
 0x1eb   : > { %v235_v57 = vrot.slane %v234_v56, 2 }
 0x1ed   : > { %v236_v58 = vadd.f32 %v235_v57, %v234_v56 }
 0x1ef   : > { %v237_v59 = vrot.slane %v236_v58, 1 }
 0x1f1   : > { %v238_v60 = vadd.f32 %v237_v59, %v236_v58 }
 0x1f3   : > { %309 = vpush %v238_v60 }
 0x224   : > { %s310_s22 = spop %309 }
 0x225   : > { %v240_v61 = vstv %s310_s22 }
 0x226   : > { %242 = vst.msk [vmem:[%s155_s21] sm:$0x1] %vm241_vm4, %v240_v61 }
 0x227 PF: > { %s12_s9 = sadd.s32 1, %s337_s9  }
 0x228   : > { %p9_p5 = scmp.ge.s32.totalorder %s12_s9, 6  }
 0x22a   :  { %11 = sbr.rel (!%p9_p5) target bundleno = 1 (0x1), region = 61 }

// kernel: tpu_custom_call.1
= control target key start
LH: loop header
LB: loop body
LE: loop exit
PB: predicated region body
PF: predicated region fallthrough
CT: control target
= control target key end

     0   :  { %s366_s9 = smov 0   ;;  %s399_s0 = inlined_call_operand.vmem [shape: f32[64,32], index: 0, kind: input, shape index: {}]   ;;  %s400_s1 = inlined_call_operand.vmem [shape: s32[64,1], index: 1, kind: input, shape index: {}]   ;;  %s401_s2 = inlined_call_operand.vmem [shape: f32[4,1,1], index: 2, kind: output, shape index: {}]  }
   0x1 LB: > { %s372_s10 = sadd.s32 4294967295, %s348_s9   ;;  %p310_p0 = scmp.ge.s32.totalorder %s348_s9, 1  ;;  %s348_s9 = sphi %s366_s9, %s12_s9  }
   0x2   : > { %p124_p1 = scmp.lt.s32.totalorder %s348_s9, 5 }
   0x4   : > { %p125_p2 = pnand %p310_p0, %p124_p1 }
   0x5   : > { %s311_s11 = sshll.u32 (!%p125_p2), %s372_s10, 1  ;;  %v350_v0 = vmov (!%p125_p2), 0   ;;  %vm168_vm0 = vcmask (!%p125_p2), 261120   ;;  %v187_v12 = vlaneseq (!%p125_p2)  ;;  %vm231_vm3 = vcmask (!%p125_p2), 7168   ;;  %p161_p4 = scmp.lt.s32.totalorder (!%p125_p2), %s372_s10, 3 }
   0x6   : > { %128 = sbr.rel (%p125_p2) target bundleno = 551 (0x227), region = 28  ;;  %p150_p3 = scmp.lt.s32.totalorder (!%p125_p2), %s311_s11, 7  ;;  %328 = vset.pattern.permute.xlu1 (!%p125_p2), %v350_v0  ;;  %329 = vset.pattern.permute.xlu0 (!%p125_p2), %v350_v0  ;;  %vm245_vm4 = vcmask (!%p125_p2), 0  }
   0x7   : > { %v188_v14 = vand.u32 (!%p125_p2), 127, %v187_v12 }
   0xd   : > { %s403_s11 = smov (!%p150_p3, %s311_s11), 7  ;;  %s405_s10 = smov (!%p161_p4, %s372_s10), 3 }
   0xe   : > { %s312_s12 = sshll.u32 %s403_s11, 3  ;;  %s163_s21 = scalar_lea.vmem %s401_s2, %s405_s10 }
   0xf   : > { %s153_s15 = scalar_lea.vmem %s399_s0, %s312_s12  ;;  %s159_s18 = scalar_lea.vmem %s400_s1, %s312_s12 }
  0x10   : > { %v164_v1 = vld [vmem:[%s153_s15] sm:$0xff]  ;;  %v165_v2 = vld [vmem:[%s153_s15 + $0x8] sm:$0xff] }
  0x11   : > { %v166_v3 = vld [vmem:[%s159_s18] sm:$0xff]  ;;  %v169_v4 = vsel %vm168_vm0, %v164_v1, -inf  ;;  %v167_v5 = vld [vmem:[%s159_s18 + $0x8] sm:$0xff]  ;;  %v172_v6 = vsel %vm168_vm0, %v165_v2, -inf }
  0x12   : > { %190 = vperm.xlu1 %328, %v166_v3   ;;  %170 = vmax.xlane.f32.xlu0 %v169_v4 }
  0x16   : > { %193 = vperm.xlu1 %328, %v167_v5   ;;  %173 = vmax.xlane.f32.xlu0 %v172_v6 }
  0x91   : > { %v191_v15 = vpop.permute.xlu1 %190 }
  0x92   : > { %vm195_vm1 = vcmp.eq.s32.totalorder %v188_v14, %v191_v15 }
  0x93   : > { %v197_v17 = vsel %vm195_vm1, %v164_v1, 0.0 }
  0x94   : > { %v199_v19 = vsel %vm168_vm0, %v197_v17, 0.0 }
  0x95   : > { %v194_v21 = vpop.permute.xlu1 %193 }
  0x96   : > { %vm196_vm2 = vcmp.eq.s32.totalorder %v188_v14, %v194_v21 }
  0x97   : > { %v198_v27 = vsel %vm196_vm2, %v165_v2, 0.0 }
  0x98   : > { %v202_v28 = vsel %vm168_vm0, %v198_v27, 0.0 }
  0x9f   : > { %v171_v7 = vpop.xlane.xlu0 %170 }
  0xa0   : > { %v175_v8 = vsub.f32 %v164_v1, %v171_v7 }
  0xa2   : > { %v177_v9 = vmul.f32 1.442695, %v175_v8 }
  0xa3   : > { %v174_v10 = vpop.xlane.xlu0 %173 }
  0xa4   : > { %330 = vpow2.f32 %v177_v9  ;;  %v176_v11 = vsub.f32 %v165_v2, %v174_v10 }
  0xa6   : > { %v179_v13 = vmul.f32 1.442695, %v176_v11 }
  0xa8   : > { %332 = vpow2.f32 %v179_v13 }
  0xae   : > { %v331_v16 = vpop.eup %330 }
  0xaf   : > { %v181_v18 = vsel %vm168_vm0, %v331_v16, 0.0  ;;  %v205_v23 = vsel %vm195_vm1, %v331_v16, 0.0 }
  0xb0   : > { %182 = vadd.xlane.f32.xlu0 %v181_v18  ;;  %v207_v24 = vsel %vm168_vm0, %v205_v23, 0.0 }
  0xb2   : > { %v333_v20 = vpop.eup %332 }
  0xb3   : > { %v184_v22 = vsel %vm168_vm0, %v333_v20, 0.0  ;;  %v206_v25 = vsel %vm196_vm2, %v333_v20, 0.0 }
  0xb4   : > { %200 = vadd.xlane.f32.xlu0 %v199_v19  ;;  %185 = vadd.xlane.f32.xlu1 %v184_v22  ;;  %v210_v26 = vsel %vm168_vm0, %v206_v25, 0.0 }
  0xb8   : > { %208 = vadd.xlane.f32.xlu0 %v207_v24 }
  0xbc   : > { %211 = vadd.xlane.f32.xlu0 %v210_v26 }
  0xc0   : > { %203 = vadd.xlane.f32.xlu0 %v202_v28 }
 0x13d   : > { %v183_v29 = vpop.xlane.xlu0 %182 }
 0x13e   : > { %334 = vlog2.f32 %v183_v29 }
 0x13f   : > { %336 = vrcp.f32 %v183_v29 }
 0x141   : > { %v186_v30 = vpop.xlane.xlu1 %185  ;;  %v201_v31 = vpop.xlane.xlu0 %200 }
 0x142   : > { %338 = vlog2.f32 %v186_v30  ;;  %v213_v43 = vsub.f32 %v171_v7, %v201_v31 }
 0x143   : > { %340 = vrcp.f32 %v186_v30 }
 0x145   : > { %v209_v32 = vpop.xlane.xlu0 %208 }
 0x148   : > { %v335_v33 = vpop.eup %334 }
 0x149   : > { %v337_v34 = vpop.eup %336  ;;  %v212_v35 = vpop.xlane.xlu0 %211  ;;  %v216_v38 = vmul.f32 0.6931472, %v335_v33 }
 0x14a   : > { %v223_v36 = vmul.f32 %v337_v34, %v209_v32 }
 0x14b   : > { %v219_v47 = vadd.f32 %v216_v38, %v213_v43 }
 0x14c   : > { %v339_v37 = vpop.eup %338  ;;  %v225_v39 = vsub.f32 1.0, %v223_v36 }
 0x14d   : > { %v341_v40 = vpop.eup %340  ;;  %v218_v41 = vmul.f32 0.6931472, %v339_v37  ;;  %v204_v42 = vpop.xlane.xlu0 %203 }
 0x14e   : > { %v227_v44 = vmul.f32 %v225_v39, %v225_v39  ;;  %v224_v45 = vmul.f32 %v341_v40, %v212_v35  ;;  %v214_v46 = vsub.f32 %v174_v10, %v204_v42 }
 0x150   : > { %v226_v48 = vsub.f32 1.0, %v224_v45  ;;  %v220_v49 = vadd.f32 %v218_v41, %v214_v46  ;;  %v229_v50 = vmul.f32 %v227_v44, %v219_v47 }
 0x152   : > { %v228_v51 = vmul.f32 %v226_v48, %v226_v48  ;;  %v232_v53 = vsel %vm231_vm3, %v229_v50, 0.0 }
 0x154   : > { %v230_v52 = vmul.f32 %v228_v51, %v220_v49 }
 0x156   : > { %v233_v54 = vsel %vm231_vm3, %v230_v52, 0.0 }
 0x157   : > { %v234_v55 = vadd.f32 %v233_v54, %v232_v53 }
 0x159   : > { %235 = vadd.xlane.f32.xlu0 %v234_v55 }
 0x1e6   : > { %v236_v56 = vpop.xlane.xlu0 %235 }
 0x1e7   : > { %v237_v57 = vrot.slane %v236_v56, 4 }
 0x1e9   : > { %v238_v58 = vadd.f32 %v237_v57, %v236_v56 }
 0x1eb   : > { %v239_v59 = vrot.slane %v238_v58, 2 }
 0x1ed   : > { %v240_v60 = vadd.f32 %v239_v59, %v238_v58 }
 0x1ef   : > { %v241_v61 = vrot.slane %v240_v60, 1 }
 0x1f1   : > { %v242_v62 = vadd.f32 %v241_v61, %v240_v60 }
 0x1f3   : > { %317 = vpush %v242_v62 }
 0x224   : > { %s318_s22 = spop %317 }
 0x225   : > { %v244_v63 = vstv %s318_s22 }
 0x226   : > { %246 = vst.msk [vmem:[%s163_s21] sm:$0x1] %vm245_vm4, %v244_v63 }
 0x227 PF: > { %s12_s9 = sadd.s32 1, %s348_s9  }
 0x228   : > { %p9_p5 = scmp.ge.s32.totalorder %s12_s9, 6  }
 0x22a   :  { %11 = sbr.rel (!%p9_p5) target bundleno = 1 (0x1), region = 61 }

</bundles_post_ra>
